<compile_context>
chip_gen: v7x
topology: tpu7x:2x2x1
jax: 0.10.0
libtpu: 0.0.40
codegen_flags: <defaults>
</compile_context>

<pallas_src>
import jax
import jax.numpy as jnp
import numpy as np
from jax.experimental import pallas as pl
from jax.experimental.pallas import tpu as pltpu


def _rope_kernel_heads(cos_ref, sna_ref, snb_ref, x_ref, o_ref):
    """(B,S,H,F) layout; F is a multiple of 128, stores stay lane-dense."""
    x = x_ref[0]                                   # (tS, H, F), native dtype
    f = x.shape[-1]
    # Pair neighbours along the lane (F) axis, still in the native dtype.
    x_next = pltpu.roll(x, shift=f - 1, axis=2)    # x[..., (k+1) % F]
    x_prev = pltpu.roll(x, shift=1, axis=2)        # x[..., (k-1) % F]
    cos = cos_ref[...][:, None, :]                 # (tS, 1, F) -> broadcast over H (sublanes)
    sna = sna_ref[...][:, None, :]
    snb = snb_ref[...][:, None, :]
    out = (x.astype(jnp.float32) * cos
           + x_next.astype(jnp.float32) * sna
           + x_prev.astype(jnp.float32) * snb)
    o_ref[0] = out.astype(o_ref.dtype)


def _rope_kernel_folded(cos_ref, sna_ref, snb_ref, x_ref, o_ref,
                        cos_sc, sna_sc, snb_sc):
    """Head-folded (B,S,H*F) layout; H-folded tables cached in VMEM scratch."""
    heads = x_ref.shape[-1] // cos_ref.shape[-1]

    @pl.when(pl.program_id(1) == 0)                # b == 0: (re)build tables for this S-tile
    def _build_tables():
        c, a, b = cos_ref[...], sna_ref[...], snb_ref[...]
        if heads > 1:
            c = jnp.concatenate([c] * heads, axis=1)
            a = jnp.concatenate([a] * heads, axis=1)
            b = jnp.concatenate([b] * heads, axis=1)
        cos_sc[...] = c
        sna_sc[...] = a
        snb_sc[...] = b

    x = x_ref[0]                                   # (tS, L), native dtype
    L = x.shape[-1]
    x_next = pltpu.roll(x, shift=L - 1, axis=1)
    x_prev = pltpu.roll(x, shift=1, axis=1)
    out = (x.astype(jnp.float32) * cos_sc[...]
           + x_next.astype(jnp.float32) * sna_sc[...]
           + x_prev.astype(jnp.float32) * snb_sc[...])
    o_ref[0] = out.astype(o_ref.dtype)


def _vmem_budget_and_limit():
    """Per-core VMEM byte budget for blocks/temps/scratch + compiler limit."""
    cap = None
    try:
        info = pltpu.get_tpu_info()
        for name in ("vmem_capacity_bytes", "vmem_size_bytes", "vmem_bytes"):
            v = getattr(info, name, None)
            if v:
                cap = int(v)
                break
    except Exception:
        cap = None
    if not cap:
        cap = 64 * 1024 * 1024            # conservative fallback: assume v7x (smallest VMEM)
    # ~48 MiB on v7x (64 MiB physical), ~96 MiB on v5e/v6e (128 MiB physical).
    limit = max(32 * 1024 * 1024, min((cap * 3) // 4, 110 * 1024 * 1024))
    budget = (limit * 17) // 20           # headroom for Mosaic internal scratch
    return budget, limit


class RotaryPositionEncoding:
    """JAX/Pallas port of the PyTorch RotaryPositionEncoding module (forward)."""

    def __init__(self, dim, base=10000.0, scale_base=None, max_s_tile=None):
        assert dim % 2 == 0, "feature dim must be even"
        self.dim = dim
        self.base = float(base)
        self.scale_base = scale_base
        self.max_s_tile = max_s_tile      # optional tuning / testing knob
        self.inv_freq = 1.0 / (
            self.base ** (jnp.arange(0, dim, 2, dtype=jnp.float32) / dim)
        )  # (dim // 2,)
        self._cache = {}                  # seq_len -> (cos, sin_a, sin_b) fp32 tables
        self._vmem_budget, self._vmem_limit = _vmem_budget_and_limit()

    def _tables(self, seq_len):
        """Memoized (S, 2*dim) fp32 tables, pair-interleaved.

        cos   = c0, c0, c1, c1, ...
        sin_a = -s0, 0, -s1, 0, ...   (coefficient of x[k+1])
        sin_b =  0, +s0, 0, +s1, ...  (coefficient of x[k-1])
        out[k] = x[k]*cos[k] + x[k+1]*sin_a[k] + x[k-1]*sin_b[k] reproduces the
        interleaved rotation (x1*c - x2*s, x1*s + x2*c); roll wrap-around and
        head-boundary lanes are multiplied by an exact 0.
        """
        hit = self._cache.get(seq_len)
        if hit is not None:
            return hit
        t = jnp.arange(seq_len, dtype=jnp.float32)
        if self.scale_base is not None:
            # Matches the reference module: t = t / scale_base (position rescale).
            t = t / self.scale_base
        freqs = t[:, None] * self.inv_freq[None, :]           # (S, dim//2)
        cosf, sinf = jnp.cos(freqs), jnp.sin(freqs)
        cos_half = jnp.concatenate([cosf, cosf], axis=-1)     # (S, dim) == cos(cat(freqs,freqs))
        sin_half = jnp.concatenate([sinf, sinf], axis=-1)     # (S, dim)
        zeros = jnp.zeros_like(sin_half)
        F = 2 * self.dim
        cos_i = jnp.repeat(cos_half, 2, axis=-1)                              # c0,c0,c1,c1,...
        sin_a = jnp.stack([-sin_half, zeros], axis=-1).reshape(seq_len, F)    # -s0,0,-s1,0,...
        sin_b = jnp.stack([zeros, sin_half], axis=-1).reshape(seq_len, F)     # 0,+s0,0,+s1,...
        tabs = (cos_i, sin_a, sin_b)
        self._cache[seq_len] = tabs
        return tabs

    def _choose_s_tile(self, S, bytes_per_row, itemsize):
        sub = max(8, 32 // itemsize)      # sublane multiple for the packed dtype
        ts = max(1, self._vmem_budget // max(1, bytes_per_row))
        if self.max_s_tile is not None:
            ts = min(ts, int(self.max_s_tile))
        if ts >= S:
            return S, sub
        ts = max(sub, (ts // sub) * sub)
        return min(ts, S), sub

    def __call__(self, x, seq_dim=1):
        # TODO(synk): the seq_dim != 1 / non-4-D permute path of forward() is not
        # covered by this kernel (only the canonical seq_dim=1, 4-D path).
        assert seq_dim == 1 and x.ndim == 4, "kernel covers the seq_dim=1, 4-D path"
        B, S, H, F = x.shape
        assert F == 2 * self.dim, "x.shape[-1] must equal 2*dim (required by the broadcast)"
        assert F % 2 == 0

        cos_i, sin_a, sin_b = self._tables(S)            # (S, F) float32, memoized

        itemsize = jnp.dtype(x.dtype).itemsize
        L = H * F
        folded = (F % 128) != 0          # fold heads into lanes only when F is lane-sparse

        # Per S-row VMEM working set:
        #   double-buffered x/out blocks + three double-buffered (ts, F) fp32 table
        #   blocks + in-kernel temporaries (3 native-dtype rolls, ~6 fp32 temps)
        #   + persistent H-folded table scratch (folded path only).
        blocks = 4 * L * itemsize + 6 * F * 4
        temps = 3 * L * itemsize + 6 * L * 4
        scratch = 3 * L * 4 if folded else 0
        bytes_per_row = blocks + temps + scratch

        ts, sub = self._choose_s_tile(S, bytes_per_row, itemsize)
        ns = pl.cdiv(S, ts)

        # v7x: both TensorCores only stream if the megacore-parallel axis has
        # >= 2 steps (for the folded path only the S axis is parallel).
        parallel_steps = ns if folded else ns * B
        if parallel_steps < 2 and S >= 2 * sub:
            ts = min(S, ((pl.cdiv(S, 2) + sub - 1) // sub) * sub)
            ns = pl.cdiv(S, ts)

        tab_spec = pl.BlockSpec((ts, F), lambda s, b: (s, 0))

        if folded:
            x_flat = x.reshape(B, S, L)                  # contiguous -> free reshape
            xo_spec = pl.BlockSpec((1, ts, L), lambda s, b: (b, s, 0))
            out_flat = pl.pallas_call(
                _rope_kernel_folded,
                out_shape=jax.ShapeDtypeStruct((B, S, L), x.dtype),
                grid_spec=pltpu.PrefetchScalarGridSpec(
                    num_scalar_prefetch=0,
                    grid=(ns, B),            # b innermost -> scratch tables reused across b
                    in_specs=[tab_spec, tab_spec, tab_spec, xo_spec],
                    out_specs=xo_spec,
                    scratch_shapes=[pltpu.VMEM((ts, L), jnp.float32)] * 3,
                ),
                compiler_params=pltpu.CompilerParams(
                    dimension_semantics=("parallel", "arbitrary"),
                    vmem_limit_bytes=self._vmem_limit,
                ),
            )(cos_i, sin_a, sin_b, x_flat)
            return out_flat.reshape(B, S, H, F)          # contiguous -> free reshape

        xo_spec = pl.BlockSpec((1, ts, H, F), lambda s, b: (b, s, 0, 0))
        return pl.pallas_call(
            _rope_kernel_heads,
            out_shape=jax.ShapeDtypeStruct((B, S, H, F), x.dtype),
            grid_spec=pltpu.PrefetchScalarGridSpec(
                num_scalar_prefetch=0,
                grid=(ns, B),
                in_specs=[tab_spec, tab_spec, tab_spec, xo_spec],
                out_specs=xo_spec,
            ),
            compiler_params=pltpu.CompilerParams(
                dimension_semantics=("parallel", "parallel"),
                vmem_limit_bytes=self._vmem_limit,
            ),
        )(cos_i, sin_a, sin_b, x)


def _rope_reference(x, dim, base=10000.0, scale_base=None):
    """Pure-JAX transcription of the PyTorch forward (seq_dim=1, 4-D)."""
    B, S, H, F = x.shape
    inv_freq = 1.0 / (base ** (jnp.arange(0, dim, 2, dtype=jnp.float32) / dim))
    t = jnp.arange(S, dtype=jnp.float32)
    if scale_base is not None:
        t = t / scale_base
    freqs = jnp.einsum("i,j->ij", t, inv_freq)
    emb = jnp.concatenate([freqs, freqs], axis=-1)
    cos = jnp.cos(emb)[None, :, None, :]
    sin = jnp.sin(emb)[None, :, None, :]
    xr = x.reshape(B, S, H, -1, 2)
    x1, x2 = xr[..., 0], xr[..., 1]
    r1 = x1 * cos - x2 * sin
    r2 = x1 * sin + x2 * cos
    return jnp.stack([r1, r2], axis=-1).reshape(B, S, H, F)


if __name__ == "__main__":
    # Test 1: float32, head-folded path (F = 32 < 128), single S tile.
    dim = 16                      # module param; feature axis of x is 2*dim = 32
    B, S, H = 2, 8, 4
    x = jax.random.normal(jax.random.PRNGKey(0), (B, S, H, 2 * dim), dtype=jnp.float32)
    rope = RotaryPositionEncoding(dim, base=10000.0, scale_base=None)
    out = jax.block_until_ready(jax.jit(lambda t: rope(t, seq_dim=1))(x))
    ref = _rope_reference(x, dim)
    assert out.shape == x.shape and out.dtype == x.dtype
    np.testing.assert_allclose(np.asarray(out), np.asarray(ref), rtol=1e-5, atol=1e-5)

    # Test 2: bfloat16, head-folded path, multi-step S tiling + scratch-table reuse.
    S2 = 32
    x2 = jax.random.normal(jax.random.PRNGKey(0), (B, S2, H, 2 * dim), dtype=jnp.bfloat16)
    rope2 = RotaryPositionEncoding(dim, max_s_tile=16)
    out2 = jax.block_until_ready(rope2(x2, seq_dim=1))
    assert out2.shape == x2.shape and out2.dtype == x2.dtype
    ref2 = _rope_reference(x2.astype(jnp.float32), dim)
    np.testing.assert_allclose(np.asarray(out2.astype(jnp.float32)), np.asarray(ref2),
                               rtol=2e-2, atol=2e-2)

    # Test 3: float32, lane-dense heads path (F = 128), sublane broadcast over H.
    dim3, S3, H3 = 64, 16, 4
    x3 = jax.random.normal(jax.random.PRNGKey(0), (B, S3, H3, 2 * dim3), dtype=jnp.float32)
    rope3 = RotaryPositionEncoding(dim3)
    out3 = jax.block_until_ready(jax.jit(lambda t: rope3(t, seq_dim=1))(x3))
    ref3 = _rope_reference(x3, dim3)
    np.testing.assert_allclose(np.asarray(out3), np.asarray(ref3), rtol=1e-5, atol=1e-5)

    # Test 4: bfloat16 heads path with scale_base and multi-tile S (grid has 2 steps).
    x4 = jax.random.normal(jax.random.PRNGKey(0), (1, 32, H3, 2 * dim3), dtype=jnp.bfloat16)
    rope4 = RotaryPositionEncoding(dim3, scale_base=512.0, max_s_tile=16)
    out4 = jax.block_until_ready(rope4(x4, seq_dim=1))
    ref4 = _rope_reference(x4.astype(jnp.float32), dim3, scale_base=512.0)
    np.testing.assert_allclose(np.asarray(out4.astype(jnp.float32)), np.asarray(ref4),
                               rtol=2e-2, atol=2e-2)

    print("KERNEL_OK")
</pallas_src>

<mosaic_0001>
module attributes {stable_mosaic.version = 11 : i64} {
  func.func @_rope_kernel_folded(%arg0: i32, %arg1: i32, %arg2: memref<8x32xf32, #tpu.memory_space<vmem>>, %arg3: memref<8x32xf32, #tpu.memory_space<vmem>>, %arg4: memref<8x32xf32, #tpu.memory_space<vmem>>, %arg5: memref<1x8x128xf32, #tpu.memory_space<vmem>>, %arg6: memref<1x8x128xf32, #tpu.memory_space<vmem>>, %arg7: memref<8x128xf32, #tpu.memory_space<vmem>>, %arg8: memref<8x128xf32, #tpu.memory_space<vmem>>, %arg9: memref<8x128xf32, #tpu.memory_space<vmem>>) attributes {dimension_semantics = [#tpu.dimension_semantics<parallel>, #tpu.dimension_semantics<arbitrary>], iteration_bounds = array<i64: 1, 2>, scalar_prefetch = 0 : i64, scratch_operands = 3 : i64, tpu.core_type = #tpu.core_type<tc>, window_params = [{transform_indices = @transform_0, window_bounds = array<i64: 8, 32>}, {transform_indices = @transform_1, window_bounds = array<i64: 8, 32>}, {transform_indices = @transform_2, window_bounds = array<i64: 8, 32>}, {transform_indices = @transform_3, window_bounds = array<i64: 1, 8, 128>}, {transform_indices = @transform_4, window_bounds = array<i64: 1, 8, 128>}]} {
    %c0_i32 = arith.constant 0 : i32
    %0 = arith.cmpi eq, %arg1, %c0_i32 : i32
    %1 = arith.extui %0 : i1 to i32
    %c0_i32_0 = arith.constant 0 : i32
    %2 = arith.cmpi ne, %1, %c0_i32_0 : i32
    scf.if %2 {
      %c0_12 = arith.constant 0 : index
      %c0_13 = arith.constant 0 : index
      %18 = vector.load %arg2[%c0_12, %c0_13] : memref<8x32xf32, #tpu.memory_space<vmem>>, vector<8x32xf32>
      %c0_14 = arith.constant 0 : index
      %c0_15 = arith.constant 0 : index
      %19 = vector.load %arg3[%c0_14, %c0_15] : memref<8x32xf32, #tpu.memory_space<vmem>>, vector<8x32xf32>
      %c0_16 = arith.constant 0 : index
      %c0_17 = arith.constant 0 : index
      %20 = vector.load %arg4[%c0_16, %c0_17] : memref<8x32xf32, #tpu.memory_space<vmem>>, vector<8x32xf32>
      %21 = tpu.concatenate %18, %18, %18, %18 in 1 : vector<8x32xf32>, vector<8x32xf32>, vector<8x32xf32>, vector<8x32xf32> -> vector<8x128xf32>
      %22 = tpu.concatenate %19, %19, %19, %19 in 1 : vector<8x32xf32>, vector<8x32xf32>, vector<8x32xf32>, vector<8x32xf32> -> vector<8x128xf32>
      %23 = tpu.concatenate %20, %20, %20, %20 in 1 : vector<8x32xf32>, vector<8x32xf32>, vector<8x32xf32>, vector<8x32xf32> -> vector<8x128xf32>
      %c0_18 = arith.constant 0 : index
      %c0_19 = arith.constant 0 : index
      %24 = vector.load %arg7[%c0_18, %c0_19] : memref<8x128xf32, #tpu.memory_space<vmem>>, vector<8x128xf32>
      tpu.vector_store %arg7[%c0_18, %c0_19], %21 {strides = array<i32>} : memref<8x128xf32, #tpu.memory_space<vmem>>, vector<8x128xf32>,
      %c0_20 = arith.constant 0 : index
      %c0_21 = arith.constant 0 : index
      %25 = vector.load %arg8[%c0_20, %c0_21] : memref<8x128xf32, #tpu.memory_space<vmem>>, vector<8x128xf32>
      tpu.vector_store %arg8[%c0_20, %c0_21], %22 {strides = array<i32>} : memref<8x128xf32, #tpu.memory_space<vmem>>, vector<8x128xf32>,
      %c0_22 = arith.constant 0 : index
      %c0_23 = arith.constant 0 : index
      %26 = vector.load %arg9[%c0_22, %c0_23] : memref<8x128xf32, #tpu.memory_space<vmem>>, vector<8x128xf32>
      tpu.vector_store %arg9[%c0_22, %c0_23], %23 {strides = array<i32>} : memref<8x128xf32, #tpu.memory_space<vmem>>, vector<8x128xf32>,
    } else {
    }
    %c0 = arith.constant 0 : index
    %c0_1 = arith.constant 0 : index
    %c0_2 = arith.constant 0 : index
    %3 = vector.load %arg5[%c0, %c0_1, %c0_2] : memref<1x8x128xf32, #tpu.memory_space<vmem>>, vector<1x8x128xf32>
    %4 = vector.shape_cast %3 : vector<1x8x128xf32> to vector<8x128xf32>
    %c127_i32 = arith.constant 127 : i32
    %5 = tpu.dynamic_rotate %4 by %c127_i32 dim 1 : vector<8x128xf32>, i32 -> vector<8x128xf32>
    %c1_i32 = arith.constant 1 : i32
    %6 = tpu.dynamic_rotate %4 by %c1_i32 dim 1 : vector<8x128xf32>, i32 -> vector<8x128xf32>
    %c0_3 = arith.constant 0 : index
    %c0_4 = arith.constant 0 : index
    %7 = vector.load %arg7[%c0_3, %c0_4] : memref<8x128xf32, #tpu.memory_space<vmem>>, vector<8x128xf32>
    %8 = arith.mulf %4, %7 : vector<8x128xf32>
    %c0_5 = arith.constant 0 : index
    %c0_6 = arith.constant 0 : index
    %9 = vector.load %arg8[%c0_5, %c0_6] : memref<8x128xf32, #tpu.memory_space<vmem>>, vector<8x128xf32>
    %10 = arith.mulf %5, %9 : vector<8x128xf32>
    %11 = arith.addf %8, %10 : vector<8x128xf32>
    %c0_7 = arith.constant 0 : index
    %c0_8 = arith.constant 0 : index
    %12 = vector.load %arg9[%c0_7, %c0_8] : memref<8x128xf32, #tpu.memory_space<vmem>>, vector<8x128xf32>
    %13 = arith.mulf %6, %12 : vector<8x128xf32>
    %14 = arith.addf %11, %13 : vector<8x128xf32>
    %c0_9 = arith.constant 0 : index
    %c0_10 = arith.constant 0 : index
    %c0_11 = arith.constant 0 : index
    %15 = vector.load %arg6[%c0_9, %c0_10, %c0_11] : memref<1x8x128xf32, #tpu.memory_space<vmem>>, vector<1x8x128xf32>
    %16 = vector.shape_cast %15 : vector<1x8x128xf32> to vector<8x128xf32>
    %17 = vector.shape_cast %14 : vector<8x128xf32> to vector<1x8x128xf32>
    tpu.vector_store %arg6[%c0_9, %c0_10, %c0_11], %17 {strides = array<i32>} : memref<1x8x128xf32, #tpu.memory_space<vmem>>, vector<1x8x128xf32>,
    return
  }
  func.func @transform_0(%arg0: i32, %arg1: i32) -> (i32, i32) {
    %c0_i32 = arith.constant 0 : i32
    %c0_i32_0 = arith.constant 0 : i32
    return %arg0, %c0_i32 : i32, i32
  }
  func.func @transform_1(%arg0: i32, %arg1: i32) -> (i32, i32) {
    %c0_i32 = arith.constant 0 : i32
    %c0_i32_0 = arith.constant 0 : i32
    return %arg0, %c0_i32 : i32, i32
  }
  func.func @transform_2(%arg0: i32, %arg1: i32) -> (i32, i32) {
    %c0_i32 = arith.constant 0 : i32
    %c0_i32_0 = arith.constant 0 : i32
    return %arg0, %c0_i32 : i32, i32
  }
  func.func @transform_3(%arg0: i32, %arg1: i32) -> (i32, i32, i32) {
    %c0_i32 = arith.constant 0 : i32
    %c0_i32_0 = arith.constant 0 : i32
    return %arg1, %arg0, %c0_i32 : i32, i32, i32
  }
  func.func @transform_4(%arg0: i32, %arg1: i32) -> (i32, i32, i32) {
    %c0_i32 = arith.constant 0 : i32
    %c0_i32_0 = arith.constant 0 : i32
    return %arg1, %arg0, %c0_i32 : i32, i32, i32
  }
}

</mosaic_0001>

<bundles_post_ra>
// kernel: _lambda_.1
= control target key start
LH: loop header
LB: loop body
LE: loop exit
PB: predicated region body
PF: predicated region fallthrough
CT: control target
= control target key end

     0   :  { %s557_s15 = smov 0   ;;  %s559_s16 = smov 0   ;;  %s605_s0 = inlined_call_operand.vmem [shape: f32[8,32], index: 0, kind: input, shape index: {}]   ;;  %s606_s1 = inlined_call_operand.vmem [shape: f32[8,32], index: 1, kind: input, shape index: {}]   ;;  %s607_s2 = inlined_call_operand.vmem [shape: f32[8,32], index: 2, kind: input, shape index: {}]   ;;  %s608_s3 = inlined_call_operand.vmem [shape: f32[2,8,128], index: 3, kind: input, shape index: {}]   ;;  %s609_s4 = inlined_call_operand.vmem [shape: f32[2,8,128], index: 4, kind: output, shape index: {}]  }
   0x1   :  { %s561_s17 = smov 0  }
   0x2 LB: > { %s23_s18 = sadd.s32 1, %s521_s16  ;;  %p468_p0 = scmp.ge.s32.totalorder %s525_s17, 1  ;;  %s525_s17 = sphi %s561_s17, %s14_s17   ;;  %s521_s16 = sphi %s559_s16, %s611_s16   ;;  %s517_s15 = sphi %s557_s15, %s610_s15  }
   0x3   : > { %p24_p1 = scmp.ge.s32.totalorder %s23_s18, 2  ;;  %p207_p2 = scmp.lt.s32.totalorder %s525_s17, 3 }
   0x5   : > { %s613_s18 = smov (%p24_p1, %s23_s18), 0  ;;  %p208_p3 = pnand %p468_p0, %p207_p2 }
   0x6   : > { %p261_p4 = scmp.lt.s32.totalorder (!%p208_p3), %s517_s15, 1  ;;  %p471_p5 = scmp.ne.s32.totalorder (!%p208_p3), %s517_s15, 0 }
   0x7   : > { %211 = sbr.rel (%p208_p3) target bundleno = 275 (0x113), region = 36 }
   0xe   : > { %s262_s19 = scalar_select %p261_p4, %s517_s15, 1 }
   0xf   : > { %278 = sbr.rel (%p471_p5) target bundleno = 150 (0x96), region = 40  ;;  %v281_v0 = vld [vmem:[%s607_s2] sm:$0xff] (!%p471_p5)  ;;  %s527_s5 = smov (!%p471_p5), 32   ;;  %vm292_vm0 = vcmask (!%p471_p5), 261120   ;;  %vm294_vm1 = vcmask (!%p471_p5), 523264   ;;  %vm296_vm2 = vcmask (!%p471_p5), 785408  }
  0x10   : > { %s469_s20 = sshll.u32 %s262_s19, 3  ;;  %v279_v1 = vld [vmem:[%s605_s0] sm:$0xff] (!%p471_p5)  ;;  %312 = vrot.lane.b32.xlu1 (!%p471_p5), %v281_v0, %s527_s5  ;;  %s528_s8 = smov (!%p471_p5), 64  }
  0x11   : > { %s578_s23 = scalar_lea.vmem %s608_s3, %s469_s20  ;;  %s583_s26 = scalar_lea.vmem %s609_s4, %s469_s20  ;;  %283 = vrot.lane.b32.xlu0 (!%p471_p5), %v279_v1, %s527_s5  ;;  %v280_v2 = vld [vmem:[%s606_s1] sm:$0xff] (!%p471_p5) }
  0x12   : > { %s529_s9 = smov (!%p471_p5), 96  }
  0x14   : > { %286 = vrot.lane.b32.xlu1 (!%p471_p5), %v279_v1, %s528_s8 }
  0x15   : > { %299 = vrot.lane.b32.xlu0 (!%p471_p5), %v280_v2, %s527_s5 }
  0x18   : > { %315 = vrot.lane.b32.xlu1 %v281_v0, %s528_s8 }
  0x19   : > { %302 = vrot.lane.b32.xlu0 %v280_v2, %s528_s8 }
  0x1c   : > { %305 = vrot.lane.b32.xlu1 %v280_v2, %s529_s9 }
  0x1d   : > { %289 = vrot.lane.b32.xlu0 %v279_v1, %s529_s9 }
  0x21   : > { %318 = vrot.lane.b32.xlu0 %v281_v0, %s529_s9 }
  0x82   : > { %v313_v3 = vpop.permute.xlu1 %312 }
  0x83   : > { %v284_v4 = vpop.permute.xlu0 %283  ;;  %v321_v17 = vsel %vm292_vm0, %v281_v0, %v313_v3 }
  0x84   : > { %v293_v9 = vsel %vm292_vm0, %v279_v1, %v284_v4 }
  0x86   : > { %v287_v5 = vpop.permute.xlu1 %286 }
  0x87   : > { %v300_v6 = vpop.permute.xlu0 %299  ;;  %v295_v11 = vsel %vm294_vm1, %v293_v9, %v287_v5 }
  0x88   : > { %v308_v10 = vsel %vm292_vm0, %v280_v2, %v300_v6 }
  0x8a   : > { %v316_v7 = vpop.permute.xlu1 %315 }
  0x8b   : > { %v303_v8 = vpop.permute.xlu0 %302  ;;  %v322_v18 = vsel %vm294_vm1, %v321_v17, %v316_v7 }
  0x8c   : > { %v309_v12 = vsel %vm294_vm1, %v308_v10, %v303_v8 }
  0x8e   : > { %v306_v13 = vpop.permute.xlu1 %305 }
  0x8f   : > { %v290_v14 = vpop.permute.xlu0 %289  ;;  %v310_v15 = vsel %vm296_vm2, %v309_v12, %v306_v13 }
  0x90   : > { %v297_v16 = vsel %vm296_vm2, %v295_v11, %v290_v14  ;;  %325 = vst [vmem:[#allocation3] sm:$0xff] %v310_v15 }
  0x91   : > { %324 = vst [vmem:[#allocation2] sm:$0xff] %v297_v16 }
  0x93   : > { %v319_v19 = vpop.permute.xlu0 %318 }
  0x94   : > { %v323_v20 = vsel %vm296_vm2, %v322_v18, %v319_v19 }
  0x95   : > { %326 = vst [vmem:[#allocation4] sm:$0xff] %v323_v20 }
  0x96 PF: > { %v327_v21 = vld [vmem:[%s578_s23] sm:$0xff]  ;;  %s530_s10 = smov 127   ;;  %s531_s11 = smov 1  }
  0x97   : > { %328 = vrot.lane.b32.xlu0 %v327_v21, %s530_s10  ;;  %v334_v23 = vld [vmem:[#allocation3] sm:$0xff] }
  0x98   : > { %v332_v22 = vld [vmem:[#allocation2] sm:$0xff] }
  0x99   : > { %v333_v25 = vmul.f32 %v332_v22, %v327_v21 }
  0x9b   : > { %330 = vrot.lane.b32.xlu0 %v327_v21, %s531_s11 }
  0x9c   : > { %v337_v27 = vld [vmem:[#allocation4] sm:$0xff] }
 0x109   : > { %v329_v24 = vpop.permute.xlu0 %328 }
 0x10a   : > { %v335_v26 = vmul.f32 %v334_v23, %v329_v24 }
 0x10c   : > { %v336_v29 = vadd.f32 %v335_v26, %v333_v25 }
 0x10d   : > { %v331_v28 = vpop.permute.xlu0 %330 }
 0x10e   : > { %v338_v30 = vmul.f32 %v337_v27, %v331_v28 }
 0x110   : > { %v339_v31 = vadd.f32 %v338_v30, %v336_v29 }
 0x112   : > { %340 = vst [vmem:[%s583_s26] sm:$0xff] %v339_v31 }
 0x113 PF: > { %s14_s17 = sadd.s32 1, %s525_s17   ;;  %s610_s15 = smov %s521_s16 }
 0x114   : > { %p11_p6 = scmp.ge.s32.totalorder %s14_s17, 4   ;;  %s611_s16 = smov %s613_s18 }
 0x116   :  { %13 = sbr.rel (!%p11_p6) target bundleno = 2 (0x2), region = 79 }

</bundles_post_ra>
